<compile_context>
chip_gen: v7x
topology: tpu7x:2x2x1
jax: 0.10.0
libtpu: 0.0.40
codegen_flags: <defaults>
</compile_context>

<pallas_src>
import functools
import math

import jax
import jax.numpy as jnp
from jax import lax
from jax.experimental import pallas as pl
from jax.experimental.pallas import tpu as pltpu


def _vmem_capacity_bytes():
    cap = 128 * 1024 * 1024
    try:
        info = pltpu.get_tpu_info()
        cap = int(getattr(info, "vmem_capacity_bytes", cap) or cap)
    except Exception:
        pass
    return cap


_VMEM_CAP = _vmem_capacity_bytes()
_VMEM_LIMIT = (_VMEM_CAP * 3) // 4          # leave headroom below physical
_BIG_VMEM = _VMEM_CAP >= 96 * 1024 * 1024   # v5e/v6e (128 MiB) vs v7x (64 MiB)


def _pick_tile(dim, prefs):
    """Largest preferred tile that divides `dim`, else the full dim."""
    for p in prefs:
        if dim % p == 0:
            return p
    return dim


# ---------------------------------------------------------------------------
# Kernel 1: tiled linear projection  y = x @ W_t + b
#   (W_t is pre-transposed / pre-cast once in prepare_params: [E_in, E_out])
# ---------------------------------------------------------------------------
def _linear_kernel(x_ref, w_ref, b_ref, o_ref, acc_ref):
    k = pl.program_id(2)

    @pl.when(k == 0)
    def _():
        acc_ref[...] = jnp.zeros_like(acc_ref)

    acc_ref[...] += jnp.dot(x_ref[...], w_ref[...],
                            preferred_element_type=jnp.float32)

    @pl.when(k == pl.num_programs(2) - 1)
    def _():
        o_ref[...] = (acc_ref[...] + b_ref[...]).astype(o_ref.dtype)


def linear(x, w_t, b, *, out_dtype=jnp.float32):
    """x: [M, K], w_t: [K, N] (already transposed & cast), b: [N] (f32)."""
    M, K = x.shape
    N = w_t.shape[1]
    if _BIG_VMEM:   # v5e / v6e: bigger tiles -> fewer grid steps
        tm = _pick_tile(M, (1024, 512, 256, 128))
        tn = _pick_tile(N, (1024, 512, 256, 128))
        tk = _pick_tile(K, (1024, 512, 256))
    else:           # v7x: 64 MiB physical VMEM
        tm = _pick_tile(M, (512, 256, 128))
        tn = _pick_tile(N, (512, 256, 128))
        tk = _pick_tile(K, (512, 256))

    x = x.astype(w_t.dtype)
    b2 = b.reshape(1, N).astype(jnp.float32)

    isz = jnp.dtype(w_t.dtype).itemsize
    cost = pl.CostEstimate(
        flops=2 * M * N * K,
        transcendentals=0,
        bytes_accessed=M * K * isz + K * N * isz + N * 4
        + M * N * jnp.dtype(out_dtype).itemsize)

    return pl.pallas_call(
        _linear_kernel,
        out_shape=jax.ShapeDtypeStruct((M, N), out_dtype),
        grid=(M // tm, N // tn, K // tk),
        in_specs=[
            pl.BlockSpec((tm, tk), lambda i, j, k: (i, k)),
            pl.BlockSpec((tk, tn), lambda i, j, k: (k, j)),
            pl.BlockSpec((1, tn), lambda i, j, k: (0, j)),
        ],
        out_specs=pl.BlockSpec((tm, tn), lambda i, j, k: (i, j)),
        scratch_shapes=[pltpu.VMEM((tm, tn), jnp.float32)],
        compiler_params=pltpu.CompilerParams(
            dimension_semantics=("parallel", "parallel", "arbitrary"),
            vmem_limit_bytes=_VMEM_LIMIT),
        cost_estimate=cost,
    )(x, w_t, b2)


# ---------------------------------------------------------------------------
# Kernel 2: per-(batch, query-tile) attention over ALL heads
#   q_ref: [tq, E] (scale already folded into the Q projection)
#   k_ref/v_ref: [Lk, E]
#   bias_ref: [Hm, tq, Lk] additive mask (0 / -1e9, f32), optional
#   o_ref: [tq, E] (single lane-dense store)
#   w_ref: [H, tq, Lk] optional attention weights
# ---------------------------------------------------------------------------
def _attn_kernel(*refs, num_heads, head_dim, has_mask, mask_heads,
                 emit_weights):
    q_ref, k_ref, v_ref = refs[0], refs[1], refs[2]
    i = 3
    bias_ref = None
    if has_mask:
        bias_ref = refs[i]
        i += 1
    o_ref = refs[i]
    i += 1
    w_ref = refs[i] if emit_weights else None

    q_all = q_ref[...]
    k_all = k_ref[...]
    v_all = v_ref[...]

    bias0 = None
    if has_mask and mask_heads == 1:
        bias0 = bias_ref[0]          # hoisted: one load shared by all heads

    aligned_store = (head_dim % 128 == 0)
    ctx_parts = []
    for h in range(num_heads):       # static unroll over heads
        lo = h * head_dim
        q_h = q_all[:, lo:lo + head_dim]
        k_h = k_all[:, lo:lo + head_dim]
        v_h = v_all[:, lo:lo + head_dim]

        # S = Q K^T: contract the shared last dim directly (no in-kernel .T).
        s = lax.dot_general(q_h, k_h, (((1,), (1,)), ((), ())),
                            preferred_element_type=jnp.float32)  # [tq, Lk]
        if has_mask:
            s = s + (bias_ref[h] if mask_heads > 1 else bias0)   # additive bias

        # numerically-stable softmax in f32; divide -> EUP approx reciprocal
        s_max = jnp.max(s, axis=-1, keepdims=True)
        p = jnp.exp(s - s_max)
        denom = jnp.sum(p, axis=-1, keepdims=True)
        attn = p * pl.reciprocal(denom, approx=True)

        if emit_weights:
            w_ref[h] = attn.astype(w_ref.dtype)

        ctx_h = jnp.dot(attn.astype(v_h.dtype), v_h,
                        preferred_element_type=jnp.float32)       # [tq, D]
        if aligned_store:
            o_ref[:, lo:lo + head_dim] = ctx_h.astype(o_ref.dtype)
        else:
            ctx_parts.append(ctx_h)

    if not aligned_store:
        ctx = ctx_parts[0] if num_heads == 1 else jnp.concatenate(ctx_parts, -1)
        o_ref[...] = ctx.astype(o_ref.dtype)   # one full-width lane-dense store


# ---------------------------------------------------------------------------
# One-time parameter preprocessing
# ---------------------------------------------------------------------------
def prepare_params(params, compute_dtype=jnp.bfloat16):
    """Fold 1/sqrt(D) into the Q projection, pre-transpose / pre-fuse / pre-cast
    all projection weights once (no per-call HBM passes over the weights)."""
    E = params["wq"].shape[0]
    H = params["num_heads"]
    D = E // H
    scale = D ** (-0.5)
    wq_s = params["wq"] * scale
    bq_s = params["bq"] * scale
    cd = jnp.dtype(compute_dtype)
    return {
        "num_heads": H, "embed_dim": E, "head_dim": D, "compute_dtype": cd,
        "wq_t": wq_s.T.astype(cd), "bq": bq_s.astype(jnp.float32),
        "wk_t": params["wk"].T.astype(cd), "bk": params["bk"].astype(jnp.float32),
        "wv_t": params["wv"].T.astype(cd), "bv": params["bv"].astype(jnp.float32),
        "wo_t": params["wo"].T.astype(cd), "bo": params["bo"].astype(jnp.float32),
        "w_qkv_t": jnp.concatenate([wq_s, params["wk"], params["wv"]],
                                   axis=0).T.astype(cd),
        "b_qkv": jnp.concatenate([bq_s, params["bk"], params["bv"]]
                                 ).astype(jnp.float32),
    }


# ---------------------------------------------------------------------------
def multihead_attention(prepared, query, key, value, attn_mask=None, *,
                        need_weights=True):
    """Returns (output [B, Lq, E] f32, attn_weights [B, H, Lq, Lk] or None)."""
    B, Lq, E = query.shape
    Lk = key.shape[1]
    H = prepared["num_heads"]
    D = prepared["head_dim"]
    cd = prepared["compute_dtype"]

    tq = _pick_tile(Lq, (256, 128))

    # NOTE: identity check misses the fused path under tracing when tensors are
    # equal but distinct objects (still correct, just slower).
    self_attn = (query is key) and (key is value)
    if self_attn:
        # Fused QKV projection -> single [B, L, 3E] activation.
        qkv = linear(query.reshape(B * Lq, E), prepared["w_qkv_t"],
                     prepared["b_qkv"], out_dtype=cd).reshape(B, Lq, 3 * E)
        if E % 128 == 0:
            # Column-block selection via index_map: no wrapper-side slices.
            q_in, k_in, v_in = qkv, qkv, qkv
            q_spec = pl.BlockSpec((pl.Squeezed(), tq, E), lambda b, qi: (b, qi, 0))
            k_spec = pl.BlockSpec((pl.Squeezed(), Lk, E), lambda b, qi: (b, 0, 1))
            v_spec = pl.BlockSpec((pl.Squeezed(), Lk, E), lambda b, qi: (b, 0, 2))
        else:
            # Small E: lane-block selection not tileable -> slice once in XLA.
            q_in = qkv[..., :E]
            k_in = qkv[..., E:2 * E]
            v_in = qkv[..., 2 * E:]
            q_spec = pl.BlockSpec((pl.Squeezed(), tq, E), lambda b, qi: (b, qi, 0))
            k_spec = pl.BlockSpec((pl.Squeezed(), Lk, E), lambda b, qi: (b, 0, 0))
            v_spec = pl.BlockSpec((pl.Squeezed(), Lk, E), lambda b, qi: (b, 0, 0))
    else:
        q_in = linear(query.reshape(B * Lq, E), prepared["wq_t"], prepared["bq"],
                      out_dtype=cd).reshape(B, Lq, E)
        k_in = linear(key.reshape(B * Lk, E), prepared["wk_t"], prepared["bk"],
                      out_dtype=cd).reshape(B, Lk, E)
        v_in = linear(value.reshape(B * Lk, E), prepared["wv_t"], prepared["bv"],
                      out_dtype=cd).reshape(B, Lk, E)
        q_spec = pl.BlockSpec((pl.Squeezed(), tq, E), lambda b, qi: (b, qi, 0))
        k_spec = pl.BlockSpec((pl.Squeezed(), Lk, E), lambda b, qi: (b, 0, 0))
        v_spec = pl.BlockSpec((pl.Squeezed(), Lk, E), lambda b, qi: (b, 0, 0))

    inputs = [q_in, k_in, v_in]
    in_specs = [q_spec, k_spec, v_spec]

    has_mask = attn_mask is not None
    mask_heads = 1
    bias = None
    if has_mask:
        m = attn_mask
        if m.ndim == 2:
            m = m[None, None]
        elif m.ndim == 3:
            m = m[:, None]
        if m.shape[2] != Lq or m.shape[3] != Lk:
            m = jnp.broadcast_to(m, (m.shape[0], m.shape[1], Lq, Lk))
        mask_B, mask_heads = m.shape[0], m.shape[1]
        # Additive bias mask (0 / -1e9): one VPU add per element in the kernel.
        bias = jnp.where(m == 0, jnp.float32(-1e9), jnp.float32(0.0))
        if mask_B == 1:
            mask_imap = lambda b, qi: (0, 0, qi, 0)
        else:
            mask_imap = lambda b, qi: (b, 0, qi, 0)
        in_specs.append(
            pl.BlockSpec((pl.Squeezed(), mask_heads, tq, Lk), mask_imap))
        inputs.append(bias)

    weights_dtype = (jnp.float32 if cd == jnp.dtype(jnp.float32)
                     else jnp.bfloat16)
    out_shapes = [jax.ShapeDtypeStruct((B, Lq, E), cd)]
    out_specs = [pl.BlockSpec((pl.Squeezed(), tq, E), lambda b, qi: (b, qi, 0))]
    if need_weights:
        out_shapes.append(jax.ShapeDtypeStruct((B, H, Lq, Lk), weights_dtype))
        out_specs.append(
            pl.BlockSpec((pl.Squeezed(), H, tq, Lk), lambda b, qi: (b, 0, qi, 0)))

    kernel = functools.partial(
        _attn_kernel, num_heads=H, head_dim=D, has_mask=has_mask,
        mask_heads=mask_heads, emit_weights=need_weights)

    isz = jnp.dtype(cd).itemsize
    bytes_acc = (2 * B * Lq * E + 2 * B * Lk * E) * isz
    if has_mask:
        bytes_acc += int(bias.size) * 4
    if need_weights:
        bytes_acc += B * H * Lq * Lk * jnp.dtype(weights_dtype).itemsize
    cost = pl.CostEstimate(flops=4 * B * H * Lq * Lk * D,
                           transcendentals=B * H * Lq * Lk,
                           bytes_accessed=int(bytes_acc))

    results = pl.pallas_call(
        kernel,
        out_shape=tuple(out_shapes),
        grid=(B, Lq // tq),
        in_specs=in_specs,
        out_specs=tuple(out_specs),
        compiler_params=pltpu.CompilerParams(
            dimension_semantics=("parallel", "parallel"),
            vmem_limit_bytes=_VMEM_LIMIT),
        cost_estimate=cost,
    )(*inputs)

    ctx = results[0]
    attn_w = results[1] if need_weights else None

    # output projection (tiled Pallas matmul); ctx is already [B, Lq, E]
    out = linear(ctx.reshape(B * Lq, E), prepared["wo_t"], prepared["bo"],
                 out_dtype=jnp.float32).reshape(B, Lq, E)
    return out, attn_w


# ---------------------------------------------------------------------------
# Pure-JAX reference (uses the raw, un-preprocessed params)
# ---------------------------------------------------------------------------
def reference(params, query, key, value, attn_mask=None):
    B, Lq, E = query.shape
    Lk = key.shape[1]
    H = params["num_heads"]
    D = E // H
    scale = D ** (-0.5)
    q = query @ params["wq"].T + params["bq"]
    k = key @ params["wk"].T + params["bk"]
    v = value @ params["wv"].T + params["bv"]
    q = q.reshape(B, Lq, H, D).transpose(0, 2, 1, 3)
    k = k.reshape(B, Lk, H, D).transpose(0, 2, 1, 3)
    v = v.reshape(B, Lk, H, D).transpose(0, 2, 1, 3)
    s = jnp.einsum("bhqd,bhkd->bhqk", q, k) * scale
    if attn_mask is not None:
        s = jnp.where(attn_mask == 0, -1e9, s)
    w = jax.nn.softmax(s, axis=-1)
    o = jnp.einsum("bhqk,bhkd->bhqd", w, v)
    o = o.transpose(0, 2, 1, 3).reshape(B, Lq, E)
    o = o @ params["wo"].T + params["bo"]
    return o, w


# ---------------------------------------------------------------------------
def init_params(key, embed_dim, num_heads):
    ks = jax.random.split(key, 8)
    bound = 1.0 / math.sqrt(embed_dim)

    def u(k, shape):
        return jax.random.uniform(k, shape, jnp.float32, -bound, bound)

    return {
        "num_heads": num_heads,
        "wq": u(ks[0], (embed_dim, embed_dim)), "bq": u(ks[1], (embed_dim,)),
        "wk": u(ks[2], (embed_dim, embed_dim)), "bk": u(ks[3], (embed_dim,)),
        "wv": u(ks[4], (embed_dim, embed_dim)), "bv": u(ks[5], (embed_dim,)),
        "wo": u(ks[6], (embed_dim, embed_dim)), "bo": u(ks[7], (embed_dim,)),
    }


if __name__ == "__main__":
    root = jax.random.PRNGKey(0)
    kp, kq, kk, kv, km, kp2, kq2, km2 = jax.random.split(root, 8)

    # 1) small-E cross-attention, f32 compute, boolean-style mask, weights out.
    B, Lq, Lk, E, H = 2, 8, 8, 32, 4
    params = init_params(kp, E, H)
    prep_f32 = prepare_params(params, compute_dtype=jnp.float32)

    query = jax.random.normal(kq, (B, Lq, E), jnp.float32)
    key_t = jax.random.normal(kk, (B, Lk, E), jnp.float32)
    value = jax.random.normal(kv, (B, Lk, E), jnp.float32)
    attn_mask = (jax.random.uniform(km, (B, H, Lq, Lk)) > 0.2).astype(jnp.float32)

    out, attn_w = multihead_attention(prep_f32, query, key_t, value, attn_mask)
    out = jax.block_until_ready(out)
    attn_w = jax.block_until_ready(attn_w)
    ref_out, ref_w = reference(params, query, key_t, value, attn_mask)
    assert out.shape == (B, Lq, E)
    assert attn_w.shape == (B, H, Lq, Lk)
    # tolerance accounts for the EUP approx-reciprocal softmax denominator
    assert jnp.allclose(out, ref_out, atol=2e-3, rtol=2e-3)
    assert jnp.allclose(attn_w, ref_w, atol=2e-3, rtol=2e-3)

    # 2) E % 128 == 0 -> fused-QKV no-slice path, bf16 MXU operands, masked.
    B2, L2, E2, H2 = 2, 8, 128, 2
    params2 = init_params(kp2, E2, H2)
    prep_bf16 = prepare_params(params2, compute_dtype=jnp.bfloat16)
    query2 = jax.random.normal(kq2, (B2, L2, E2), jnp.float32)
    mask2 = (jax.random.uniform(km2, (B2, H2, L2, L2)) > 0.2).astype(jnp.float32)

    out2, attn_w2 = multihead_attention(prep_bf16, query2, query2, query2, mask2)
    out2 = jax.block_until_ready(out2)
    attn_w2 = jax.block_until_ready(attn_w2)
    ref_out2, ref_w2 = reference(params2, query2, query2, query2, mask2)
    assert jnp.allclose(out2, ref_out2, atol=5e-2, rtol=5e-2)
    assert jnp.allclose(attn_w2.astype(jnp.float32), ref_w2, atol=3e-2, rtol=3e-2)

    # 3) weights output elided (skips the [B,H,Lq,Lk] HBM writeback), no mask.
    out3, none_w = multihead_attention(prep_bf16, query2, query2, query2, None,
                                       need_weights=False)
    out3 = jax.block_until_ready(out3)
    ref_out3, _ = reference(params2, query2, query2, query2, None)
    assert none_w is None
    assert jnp.allclose(out3, ref_out3, atol=5e-2, rtol=5e-2)

    print("KERNEL_OK")
</pallas_src>

<mosaic_0001>
module attributes {stable_mosaic.version = 11 : i64} {
  func.func @_linear_kernel(%arg0: i32, %arg1: i32, %arg2: i32, %arg3: memref<16x32xf32, #tpu.memory_space<vmem>>, %arg4: memref<32x32xf32, #tpu.memory_space<vmem>>, %arg5: memref<1x32xf32, #tpu.memory_space<vmem>>, %arg6: memref<16x32xf32, #tpu.memory_space<vmem>>, %arg7: memref<16x32xf32, #tpu.memory_space<vmem>>) attributes {dimension_semantics = [#tpu.dimension_semantics<parallel>, #tpu.dimension_semantics<parallel>, #tpu.dimension_semantics<arbitrary>], iteration_bounds = array<i64: 1, 1, 1>, scalar_prefetch = 0 : i64, scratch_operands = 1 : i64, tpu.core_type = #tpu.core_type<tc>, window_params = [{transform_indices = @transform_0, window_bounds = array<i64: 16, 32>}, {transform_indices = @transform_1, window_bounds = array<i64: 32, 32>}, {transform_indices = @transform_2, window_bounds = array<i64: 1, 32>}, {transform_indices = @transform_3, window_bounds = array<i64: 16, 32>}]} {
    %c0_i32 = arith.constant 0 : i32
    %0 = arith.cmpi eq, %arg2, %c0_i32 : i32
    %1 = arith.extui %0 : i1 to i32
    %c0_i32_0 = arith.constant 0 : i32
    %2 = arith.cmpi ne, %1, %c0_i32_0 : i32
    scf.if %2 {
      %cst_10 = arith.constant 0.000000e+00 : f32
      %12 = vector.broadcast %cst_10 : f32 to vector<16x32xf32>
      %c0_11 = arith.constant 0 : index
      %c0_12 = arith.constant 0 : index
      %13 = vector.load %arg7[%c0_11, %c0_12] : memref<16x32xf32, #tpu.memory_space<vmem>>, vector<16x32xf32>
      tpu.vector_store %arg7[%c0_11, %c0_12], %12 {strides = array<i32>} : memref<16x32xf32, #tpu.memory_space<vmem>>, vector<16x32xf32>,
    } else {
    }
    %c0 = arith.constant 0 : index
    %c0_1 = arith.constant 0 : index
    %3 = vector.load %arg7[%c0, %c0_1] : memref<16x32xf32, #tpu.memory_space<vmem>>, vector<16x32xf32>
    %c0_2 = arith.constant 0 : index
    %c0_3 = arith.constant 0 : index
    %4 = vector.load %arg3[%c0_2, %c0_3] : memref<16x32xf32, #tpu.memory_space<vmem>>, vector<16x32xf32>
    %c0_4 = arith.constant 0 : index
    %c0_5 = arith.constant 0 : index
    %5 = vector.load %arg4[%c0_4, %c0_5] : memref<32x32xf32, #tpu.memory_space<vmem>>, vector<32x32xf32>
    %cst = arith.constant dense<0.000000e+00> : vector<16x32xf32>
    %6 = tpu.matmul %4, %5, %cst {dimension_numbers = #tpu.dot_dimension_numbers<[1], [0], [0], [1], [0, 0, 1, 1], [], []>} : vector<16x32xf32>, vector<32x32xf32>, vector<16x32xf32> -> vector<16x32xf32>
    %7 = arith.addf %3, %6 : vector<16x32xf32>
    %c0_6 = arith.constant 0 : index
    %c0_7 = arith.constant 0 : index
    %8 = vector.load %arg7[%c0_6, %c0_7] : memref<16x32xf32, #tpu.memory_space<vmem>>, vector<16x32xf32>
    tpu.vector_store %arg7[%c0_6, %c0_7], %7 {strides = array<i32>} : memref<16x32xf32, #tpu.memory_space<vmem>>, vector<16x32xf32>,
    %c0_i32_8 = arith.constant 0 : i32
    %9 = arith.cmpi eq, %arg2, %c0_i32_8 : i32
    %10 = arith.extui %9 : i1 to i32
    %c0_i32_9 = arith.constant 0 : i32
    %11 = arith.cmpi ne, %10, %c0_i32_9 : i32
    scf.if %11 {
      %c0_10 = arith.constant 0 : index
      %c0_11 = arith.constant 0 : index
      %12 = vector.load %arg7[%c0_10, %c0_11] : memref<16x32xf32, #tpu.memory_space<vmem>>, vector<16x32xf32>
      %c0_12 = arith.constant 0 : index
      %c0_13 = arith.constant 0 : index
      %13 = vector.load %arg5[%c0_12, %c0_13] : memref<1x32xf32, #tpu.memory_space<vmem>>, vector<1x32xf32>
      %14 = vector.broadcast %13 : vector<1x32xf32> to vector<16x32xf32>
      %15 = arith.addf %12, %14 : vector<16x32xf32>
      %c0_14 = arith.constant 0 : index
      %c0_15 = arith.constant 0 : index
      %16 = vector.load %arg6[%c0_14, %c0_15] : memref<16x32xf32, #tpu.memory_space<vmem>>, vector<16x32xf32>
      tpu.vector_store %arg6[%c0_14, %c0_15], %15 {strides = array<i32>} : memref<16x32xf32, #tpu.memory_space<vmem>>, vector<16x32xf32>,
    } else {
    }
    return
  }
  func.func @transform_0(%arg0: i32, %arg1: i32, %arg2: i32) -> (i32, i32) {
    %c0_i32 = arith.constant 0 : i32
    return %arg0, %arg2 : i32, i32
  }
  func.func @transform_1(%arg0: i32, %arg1: i32, %arg2: i32) -> (i32, i32) {
    %c0_i32 = arith.constant 0 : i32
    return %arg2, %arg1 : i32, i32
  }
  func.func @transform_2(%arg0: i32, %arg1: i32, %arg2: i32) -> (i32, i32) {
    %c0_i32 = arith.constant 0 : i32
    %c0_i32_0 = arith.constant 0 : i32
    return %c0_i32, %arg1 : i32, i32
  }
  func.func @transform_3(%arg0: i32, %arg1: i32, %arg2: i32) -> (i32, i32) {
    %c0_i32 = arith.constant 0 : i32
    return %arg0, %arg1 : i32, i32
  }
}

</mosaic_0001>

<bundles_post_ra>
// kernel: tpu_custom_call.1
= control target key start
LH: loop header
LB: loop body
LE: loop exit
PB: predicated region body
PF: predicated region fallthrough
CT: control target
= control target key end

     0   :  { %8 = vsyncpa [#allocation4], 0  ;;  %s417_s0 = inlined_call_operand.hbm [shape: f32[16,32], index: 0, kind: input, shape index: {}]   ;;  %s418_s1 = inlined_call_operand.hbm [shape: f32[32,32], index: 1, kind: input, shape index: {}]   ;;  %s419_s2 = inlined_call_operand.hbm [shape: f32[1,32], index: 2, kind: input, shape index: {}]   ;;  %s420_s3 = inlined_call_operand.hbm [shape: f32[16,32], index: 3, kind: output, shape index: {}]  }
   0x1   :  { %9 = vsyncpa [#allocation7], 0 }
   0x2   :  { %10 = vsyncpa [#allocation5], 0  ;;  %s318_s12 = smov [#allocation6]   ;;  %s319_s14 = smov [#allocation3]  }
   0x3   :  { %s28_s13 = sshll.u32 %s318_s12, 4  ;;  %s16_s15 = sshll.u32 %s319_s14, 4  ;;  %s29_s13 = int_to_ptr.vmem [resolvable:$true] %s28_s13  ;;  %s345_s15 = int_to_ptr.vmem [resolvable:$true] %s16_s15 }
   0x4   :  { %s224_s18 = scalar_lea.hbm %s418_s1, 512 }
   0x5   :  { %p225_p0 = scmp.ne.s32.totalorder %s418_s1, %s224_s18  ;;  %p228_p1 = scmp.lt.u32.totalorder %s224_s18, %s418_s1 }
   0x7   :  { %p230_p2 = pnand %p228_p1, %p225_p0 }
   0x9   :  { %233 = shalt.err (!%p230_p2)
}
   0xa   :  { %s234_s23 = scalar_lea.vmem %s29_s13, 512  ;;  %p239_p4 = scmp.lt.s32.totalorder %s29_s13, %s29_s13 }
   0xb   :  { %p235_p3 = scmp.ne.s32.totalorder %s29_s13, %s234_s23  ;;  %p240_p5 = scmp.lt.s32.totalorder %s234_s23, %s234_s23 }
   0xd   :  { %p241_p6 = por %p240_p5, %p239_p4 }
   0xf   :  { %p242_p7 = pnand %p241_p6, %p235_p3 }
  0x11   :  { %245 = shalt.err (!%p242_p7)
}
  0x12   :  { %s320_s24 = smov 128   ;;  %s321_s25 = smov 8  }
  0x13   :  { %34 = dma.hbm_to_vmem [thread:$0]  %s418_s1, 512, %s29_s13, [#allocation7], %s320_s24, %s320_s24, %s321_s25  }
  0x14   :  { %s246_s30 = scalar_lea.hbm %s417_s0, 256 }
  0x15   :  { %p247_p8 = scmp.ne.s32.totalorder %s417_s0, %s246_s30  ;;  %p250_p9 = scmp.lt.u32.totalorder %s246_s30, %s417_s0 }
  0x17   :  { %p252_p10 = pnand %p250_p9, %p247_p8 }
  0x19   :  { %255 = shalt.err (!%p252_p10)
}
  0x1a   :  { %s256_s8 = scalar_lea.vmem %s345_s15, 256  ;;  %p261_p12 = scmp.lt.s32.totalorder %s345_s15, %s345_s15 }
  0x1b   :  { %p257_p11 = scmp.ne.s32.totalorder %s345_s15, %s256_s8  ;;  %p262_p13 = scmp.lt.s32.totalorder %s256_s8, %s256_s8 }
  0x1d   :  { %p263_p0 = por %p262_p13, %p261_p12 }
  0x1f   :  { %p264_p1 = pnand %p263_p0, %p257_p11 }
  0x21   :  { %267 = shalt.err (!%p264_p1)
}
  0x22   :  { %22 = dma.hbm_to_vmem [thread:$0]  %s417_s0, 256, %s345_s15, [#allocation4], %s320_s24, %s320_s24, %s321_s25  }
  0x23   :  { %s322_s10 = smov [#allocation8]   ;;  %s268_s14 = scalar_lea.hbm %s419_s2, 16 }
  0x24   :  { %s41_s11 = sshll.u32 %s322_s10, 4  ;;  %p269_p2 = scmp.ne.s32.totalorder %s419_s2, %s268_s14  ;;  %s42_s11 = int_to_ptr.vmem [resolvable:$true] %s41_s11 }
  0x25   :  { %p272_p3 = scmp.lt.u32.totalorder %s268_s14, %s419_s2 }
  0x27   :  { %p274_p4 = pnand %p272_p3, %p269_p2 }
  0x29   :  { %277 = shalt.err (!%p274_p4)
}
  0x2a   :  { %s278_s20 = scalar_lea.vmem %s42_s11, 16  ;;  %s282_s0 = scalar_lea.vmem %s42_s11, 32 }
  0x2b   :  { %p279_p5 = scmp.ne.s32.totalorder %s42_s11, %s278_s20  ;;  %p283_p6 = scmp.lt.s32.totalorder %s42_s11, %s42_s11 }
  0x2c   :  { %p284_p7 = scmp.lt.s32.totalorder %s282_s0, %s278_s20 }
  0x2e   :  { %p285_p8 = por %p284_p7, %p283_p6 }
  0x30   :  { %p286_p9 = pnand %p285_p8, %p279_p5 }
  0x32   :  { %289 = shalt.err (!%p286_p9)
}
  0x33   :  { %44 = dma.hbm_to_vmem [thread:$0]  %s419_s2, 16, %s42_s11, [#allocation7]  }
  0x34   :  { %312 = dma.done.wait [#allocation4], 256  }
  0x35   :  { %313 = vsyncadd [#allocation4], 4294967040 }
  0x36   :  { %314 = dma.done.wait [#allocation7], 528  }
  0x37   :  { %315 = vsyncadd [#allocation7], 4294966768  ;;  %vm58_vm0 = vcmask 261120   ;;  %v323_v0 = vmov 0.0   ;;  %v65_v1 = vld [vmem:[#allocation6] sm:$0xff]  ;;  %v66_v2 = vld [vmem:[#allocation6 + $0x8] sm:$0xff] }
  0x38   :  { %60 = vst.msk [vmem:[#allocation2 + $0x8] sm:$0xff] %vm58_vm0, %v323_v0  ;;  %59 = vst.msk [vmem:[#allocation2] sm:$0xff] %vm58_vm0, %v323_v0  ;;  %v67_v3 = vld [vmem:[#allocation6 + $0x10] sm:$0xff]  ;;  %v209_v4 = vpack.c.bf16 %v66_v2, %v65_v1  ;;  %v68_v5 = vld [vmem:[#allocation6 + $0x18] sm:$0xff]  ;;  %s324_s2 = smov [#allocation9]  }
  0x39   :  { %v63_v6 = vld [vmem:[#allocation3] sm:$0xff]  ;;  %v213_v7 = vpack.c.bf16 %v68_v5, %v67_v3  ;;  %v64_v8 = vld [vmem:[#allocation3 + $0x8] sm:$0xff]  ;;  %v191_v15 = vld [vmem:[#allocation8] ss:$0 sm:$0xff]  ;;  %s176_s22 = sshll.u32 %s324_s2, 4  ;;  %s177_s22 = int_to_ptr.vmem [resolvable:$true] %s176_s22 }
  0x3a   :  { %206 = vmatprep.mubr.msk.f32.mxu0 %vm58_vm0, %v63_v6  ;;  %210 = vmatprep.subr.bf16.mxu0 %v209_v4  ;;  %s290_s23 = scalar_lea.vmem %s177_s22, 256  ;;  %p295_p11 = scmp.lt.s32.totalorder %s177_s22, %s177_s22 }
  0x3b   :  { %212 = vmatpush3.bf16.msra.mxu0 %v209_v4  ;;  %p291_p10 = scmp.ne.s32.totalorder %s177_s22, %s290_s23  ;;  %p296_p12 = scmp.lt.s32.totalorder %s290_s23, %s290_s23 }
  0x3c   :  { %214 = vmatprep.subr.bf16.mxu0 %v213_v7 }
  0x3d   :  { %p297_p13 = por %p296_p12, %p295_p11 }
  0x3f   :  { %216 = vmatpush3.bf16.msra.mxu0 %v213_v7  ;;  %v62_v9 = vld [vmem:[#allocation2 + $0x8] sm:$0xff]  ;;  %v61_v10 = vld [vmem:[#allocation2] sm:$0xff]  ;;  %p298_p0 = pnand %p297_p13, %p291_p10 }
  0x42   :  { %207 = vmatmul.mubr.msk.f32.vlgmr.msra.gmra.mrb[0].mxu0 %vm58_vm0, %v64_v8 }
 0x115   :  { %v208_v11 = vpop.f32.mrb[0].mxu0 }
 0x116   :  { %v152_v12 = vadd.f32 %v208_v11, %v62_v9  ;;  %v142_v13 = vpop.f32.mrb[1].mxu0 }
 0x117   :  { %v151_v14 = vadd.f32 %v142_v13, %v61_v10 }
 0x118   :  { %154 = vst.msk [vmem:[#allocation2 + $0x8] sm:$0xff] %vm58_vm0, %v152_v12 }
 0x119   :  { %153 = vst.msk [vmem:[#allocation2] sm:$0xff] %vm58_vm0, %v151_v14 }
 0x11f   :  { %v159_v16 = vld [vmem:[#allocation2 + $0x8] sm:$0xff] }
 0x120   :  { %v158_v17 = vld [vmem:[#allocation2] sm:$0xff]  ;;  %v168_v18 = vadd.f32 %v191_v15, %v159_v16 }
 0x121   :  { %v167_v19 = vadd.f32 %v191_v15, %v158_v17 }
 0x122   :  { %170 = vst.msk [vmem:[#allocation9 + $0x8] sm:$0xff] %vm58_vm0, %v168_v18 }
 0x123   :  { %169 = vst.msk [vmem:[#allocation9] sm:$0xff] %vm58_vm0, %v167_v19 }
 0x124   :  { %301 = shalt.err (!%p298_p0)
}
 0x125   :  { %s302_s28 = scalar_lea.hbm %s420_s3, 256 }
 0x126   :  { %p303_p1 = scmp.ne.s32.totalorder %s420_s3, %s302_s28  ;;  %p306_p2 = scmp.lt.u32.totalorder %s302_s28, %s420_s3 }
 0x128   :  { %p308_p3 = pnand %p306_p2, %p303_p1 }
 0x12a   :  { %311 = shalt.err (!%p308_p3)
}
 0x12b   :  { %182 = dma.vmem_to_hbm [thread:$0]  %s177_s22, 256, %s420_s3, [#allocation5], %s320_s24, %s320_s24, %s321_s25  }
 0x12c   :  { %316 = dma.done.wait [#allocation5], 256  }
 0x12d   :  { %317 = vsyncadd [#allocation5], 4294967040 }
 0x12e   :  { %186 = vsyncpa [#allocation4], 1 }
 0x12f   :  { %187 = vsyncpa [#allocation7], 1 }
 0x130   :  { %188 = vsyncpa [#allocation5], 1 }

</bundles_post_ra>
